<compile_context>
chip_gen: v7x
topology: tpu7x:2x2x1
jax: 0.10.0
libtpu: 0.0.40
codegen_flags: <defaults>
</compile_context>

<pallas_src>
import jax
import jax.numpy as jnp
from jax.experimental import pallas as pl
from jax.experimental.pallas import tpu as pltpu

H = 256
NEG_SLOPE = 0.01  # F.leaky_relu default negative_slope


def _round_up(x, m):
    return ((x + m - 1) // m) * m


def _pick_batch_tile(batch, max_tile):
    """Whole (8-rounded) batch when small; otherwise a multiple of 256 capped
    at max_tile and sized so the parallel grid axis has >= 2 steps."""
    b8 = _round_up(batch, 8)
    if b8 <= 256:
        return b8
    half = _round_up((b8 + 1) // 2, 256)
    return max(256, min(max_tile, half))


def mlp_kernel(x_ref, w1_ref, w2_ref, w3_ref, w4_ref, w5_ref,
               b14_ref, b5_ref, o_ref):
    """Whole 5-layer forward for one (batch_tile, .) slab, resident in VMEM."""
    slope = jnp.bfloat16(NEG_SLOPE)
    b14 = b14_ref[...]  # (4, H) f32

    def layer(h, w_ref, b_row):
        # bf16 MXU matmul with f32 accumulation, bias add in f32, then cast to
        # bf16 and apply leaky_relu as a single maximum on packed bf16 vregs.
        y = jnp.dot(h, w_ref[...], preferred_element_type=jnp.float32) + b_row
        y = y.astype(jnp.bfloat16)
        return jnp.maximum(y, slope * y)

    h = x_ref[...].astype(jnp.bfloat16)          # (tile, D_in)
    h = layer(h, w1_ref, b14[0:1, :])
    h = layer(h, w2_ref, b14[1:2, :])
    h = layer(h, w3_ref, b14[2:3, :])
    h = layer(h, w4_ref, b14[3:4, :])
    y = jnp.dot(h, w5_ref[...], preferred_element_type=jnp.float32) + b5_ref[...]
    o_ref[...] = y.astype(o_ref.dtype)


def prepare_params(params):
    """One-time parameter prep (hoisted out of the per-forward path):
    cast weights to bf16 (MXU-native) and stack the four H-wide biases."""
    return {
        "w1": params["w1"].astype(jnp.bfloat16),   # (D_in, H)
        "w2": params["w2"].astype(jnp.bfloat16),   # (H, H)
        "w3": params["w3"].astype(jnp.bfloat16),
        "w4": params["w4"].astype(jnp.bfloat16),
        "w5": params["w5"].astype(jnp.bfloat16),   # (H, D_out)
        "b14": jnp.concatenate(
            [params["b1"], params["b2"], params["b3"], params["b4"]],
            axis=0).astype(jnp.float32),           # (4, H)
        "b5": params["b5"].astype(jnp.float32),    # (1, D_out)
    }


def mlp_forward(x, prep, *, max_batch_tile=1024):
    """x: (B, D_in) f32. prep: output of prepare_params. Returns (B, D_out) f32."""
    B, D_in = x.shape
    D_out = prep["w5"].shape[1]
    h = prep["w2"].shape[0]
    assert prep["w1"].shape[0] == D_in

    tile = _pick_batch_tile(B, max_batch_tile)
    grid = (pl.cdiv(B, tile),)  # ragged last tile handled by masked edge block

    def x_map(i):
        return (i, 0)

    def const_map(i):
        return (0, 0)

    in_specs = [
        pl.BlockSpec((tile, D_in), x_map),
        pl.BlockSpec(prep["w1"].shape, const_map),
        pl.BlockSpec(prep["w2"].shape, const_map),
        pl.BlockSpec(prep["w3"].shape, const_map),
        pl.BlockSpec(prep["w4"].shape, const_map),
        pl.BlockSpec(prep["w5"].shape, const_map),
        pl.BlockSpec(prep["b14"].shape, const_map),
        pl.BlockSpec(prep["b5"].shape, const_map),
    ]
    out_spec = pl.BlockSpec((tile, D_out), x_map)

    flops = 2 * B * (D_in * h + 3 * h * h + h * D_out)
    bytes_accessed = (
        x.size * 4
        + sum(prep[k].size * 2 for k in ("w1", "w2", "w3", "w4", "w5"))
        + (prep["b14"].size + prep["b5"].size) * 4
        + B * D_out * 4
    )

    return pl.pallas_call(
        mlp_kernel,
        out_shape=jax.ShapeDtypeStruct((B, D_out), jnp.float32),
        grid_spec=pltpu.PrefetchScalarGridSpec(
            num_scalar_prefetch=0,
            grid=grid,
            in_specs=in_specs,
            out_specs=out_spec,
        ),
        compiler_params=pltpu.CompilerParams(
            dimension_semantics=("parallel",)),
        cost_estimate=pl.CostEstimate(
            flops=flops, transcendentals=0, bytes_accessed=bytes_accessed),
    )(x, prep["w1"], prep["w2"], prep["w3"], prep["w4"], prep["w5"],
      prep["b14"], prep["b5"])


def init_params(key, input_dim, output_dim):
    """Deterministic init mirroring nn.Linear's uniform(-1/sqrt(fan_in), 1/sqrt(fan_in)).
    Weights stored as (in_features, out_features), f32."""
    dims = [(input_dim, H), (H, H), (H, H), (H, H), (H, output_dim)]
    params = {}
    for idx, (fan_in, fan_out) in enumerate(dims, start=1):
        key, kw, kb = jax.random.split(key, 3)
        bound = 1.0 / jnp.sqrt(jnp.float32(fan_in))
        params[f"w{idx}"] = jax.random.uniform(
            kw, (fan_in, fan_out), jnp.float32, -bound, bound)
        params[f"b{idx}"] = jax.random.uniform(
            kb, (1, fan_out), jnp.float32, -bound, bound)
    return params


def reference_forward(x, params):
    """Pure-JAX reference mirroring the kernel numerics
    (bf16 matmul operands, f32 accumulation + bias, leaky_relu on bf16)."""
    slope = jnp.bfloat16(NEG_SLOPE)
    hh = x.astype(jnp.bfloat16)
    for idx in range(1, 5):
        w = params[f"w{idx}"].astype(jnp.bfloat16)
        y = jnp.dot(hh, w, preferred_element_type=jnp.float32) + params[f"b{idx}"]
        y = y.astype(jnp.bfloat16)
        hh = jnp.maximum(y, slope * y)
    w5 = params["w5"].astype(jnp.bfloat16)
    return jnp.dot(hh, w5, preferred_element_type=jnp.float32) + params["b5"]


if __name__ == "__main__":
    key = jax.random.PRNGKey(0)
    input_dim = 4      # Model(input_dim=(4,), output_dim=4)
    output_dim = 4

    kx, kp, kx2 = jax.random.split(key, 3)
    params = init_params(kp, input_dim, output_dim)
    prep = prepare_params(params)          # hoisted: computed once, reused

    # Small batch: single tile, no padding of x anywhere.
    x = jax.random.normal(kx, (8, input_dim), jnp.float32)
    out = jax.block_until_ready(mlp_forward(x, prep))
    ref = reference_forward(x, params)
    assert out.shape == (8, output_dim)
    assert jnp.allclose(out, ref, atol=1e-2, rtol=1e-2)

    # Larger ragged batch: exercises the 2-step parallel grid + masked edge tile.
    x2 = jax.random.normal(kx2, (300, input_dim), jnp.float32)
    out2 = jax.block_until_ready(mlp_forward(x2, prep))
    ref2 = reference_forward(x2, params)
    assert out2.shape == (300, output_dim)
    assert jnp.allclose(out2, ref2, atol=1e-2, rtol=1e-2)

    print("KERNEL_OK")
</pallas_src>

<mosaic_0001>
module attributes {stable_mosaic.version = 11 : i64} {
  func.func @mlp_kernel(%arg0: i32, %arg1: memref<8x4xf32, #tpu.memory_space<vmem>>, %arg2: memref<4x256xbf16, #tpu.memory_space<vmem>>, %arg3: memref<256x256xbf16, #tpu.memory_space<vmem>>, %arg4: memref<256x256xbf16, #tpu.memory_space<vmem>>, %arg5: memref<256x256xbf16, #tpu.memory_space<vmem>>, %arg6: memref<256x4xbf16, #tpu.memory_space<vmem>>, %arg7: memref<4x256xf32, #tpu.memory_space<vmem>>, %arg8: memref<1x4xf32, #tpu.memory_space<vmem>>, %arg9: memref<8x4xf32, #tpu.memory_space<vmem>>) attributes {dimension_semantics = [#tpu.dimension_semantics<parallel>], iteration_bounds = array<i64: 1>, scalar_prefetch = 0 : i64, scratch_operands = 0 : i64, tpu.core_type = #tpu.core_type<tc>, window_params = [{transform_indices = @transform_0, window_bounds = array<i64: 8, 4>}, {pipeline_mode = #tpu.pipeline_mode<synchronous>, transform_indices = @transform_1, window_bounds = array<i64: 4, 256>}, {pipeline_mode = #tpu.pipeline_mode<synchronous>, transform_indices = @transform_2, window_bounds = array<i64: 256, 256>}, {pipeline_mode = #tpu.pipeline_mode<synchronous>, transform_indices = @transform_3, window_bounds = array<i64: 256, 256>}, {pipeline_mode = #tpu.pipeline_mode<synchronous>, transform_indices = @transform_4, window_bounds = array<i64: 256, 256>}, {pipeline_mode = #tpu.pipeline_mode<synchronous>, transform_indices = @transform_5, window_bounds = array<i64: 256, 4>}, {pipeline_mode = #tpu.pipeline_mode<synchronous>, transform_indices = @transform_6, window_bounds = array<i64: 4, 256>}, {pipeline_mode = #tpu.pipeline_mode<synchronous>, transform_indices = @transform_7, window_bounds = array<i64: 1, 4>}, {transform_indices = @transform_8, window_bounds = array<i64: 8, 4>}]} {
    %c0 = arith.constant 0 : index
    %c0_0 = arith.constant 0 : index
    %0 = vector.load %arg7[%c0, %c0_0] : memref<4x256xf32, #tpu.memory_space<vmem>>, vector<4x256xf32>
    %c0_1 = arith.constant 0 : index
    %c0_2 = arith.constant 0 : index
    %1 = vector.load %arg1[%c0_1, %c0_2] : memref<8x4xf32, #tpu.memory_space<vmem>>, vector<8x4xf32>
    %2 = arith.truncf %1 : vector<8x4xf32> to vector<8x4xbf16>
    %3 = vector.extract_strided_slice %0 {offsets = [0, 0], sizes = [1, 256], strides = [1, 1]} : vector<4x256xf32> to vector<1x256xf32>
    %c0_3 = arith.constant 0 : index
    %c0_4 = arith.constant 0 : index
    %4 = vector.load %arg2[%c0_3, %c0_4] : memref<4x256xbf16, #tpu.memory_space<vmem>>, vector<4x256xbf16>
    %cst = arith.constant dense<0.000000e+00> : vector<8x256xf32>
    %5 = tpu.matmul %2, %4, %cst {dimension_numbers = #tpu.dot_dimension_numbers<[1], [0], [0], [1], [0, 0, 1, 1], [], []>} : vector<8x4xbf16>, vector<4x256xbf16>, vector<8x256xf32> -> vector<8x256xf32>
    %6 = vector.broadcast %3 : vector<1x256xf32> to vector<8x256xf32>
    %7 = arith.addf %5, %6 : vector<8x256xf32>
    %8 = arith.truncf %7 : vector<8x256xf32> to vector<8x256xbf16>
    %cst_5 = arith.constant 1.000980e-02 : bf16
    %9 = vector.broadcast %cst_5 : bf16 to vector<8x256xbf16>
    %10 = arith.mulf %9, %8 : vector<8x256xbf16>
    %11 = arith.maximumf %8, %10 : vector<8x256xbf16>
    %12 = vector.extract_strided_slice %0 {offsets = [1, 0], sizes = [1, 256], strides = [1, 1]} : vector<4x256xf32> to vector<1x256xf32>
    %c0_6 = arith.constant 0 : index
    %c0_7 = arith.constant 0 : index
    %13 = vector.load %arg3[%c0_6, %c0_7] : memref<256x256xbf16, #tpu.memory_space<vmem>>, vector<256x256xbf16>
    %cst_8 = arith.constant dense<0.000000e+00> : vector<8x256xf32>
    %14 = tpu.matmul %11, %13, %cst_8 {dimension_numbers = #tpu.dot_dimension_numbers<[1], [0], [0], [1], [0, 0, 1, 1], [], []>} : vector<8x256xbf16>, vector<256x256xbf16>, vector<8x256xf32> -> vector<8x256xf32>
    %15 = vector.broadcast %12 : vector<1x256xf32> to vector<8x256xf32>
    %16 = arith.addf %14, %15 : vector<8x256xf32>
    %17 = arith.truncf %16 : vector<8x256xf32> to vector<8x256xbf16>
    %cst_9 = arith.constant 1.000980e-02 : bf16
    %18 = vector.broadcast %cst_9 : bf16 to vector<8x256xbf16>
    %19 = arith.mulf %18, %17 : vector<8x256xbf16>
    %20 = arith.maximumf %17, %19 : vector<8x256xbf16>
    %21 = vector.extract_strided_slice %0 {offsets = [2, 0], sizes = [1, 256], strides = [1, 1]} : vector<4x256xf32> to vector<1x256xf32>
    %c0_10 = arith.constant 0 : index
    %c0_11 = arith.constant 0 : index
    %22 = vector.load %arg4[%c0_10, %c0_11] : memref<256x256xbf16, #tpu.memory_space<vmem>>, vector<256x256xbf16>
    %cst_12 = arith.constant dense<0.000000e+00> : vector<8x256xf32>
    %23 = tpu.matmul %20, %22, %cst_12 {dimension_numbers = #tpu.dot_dimension_numbers<[1], [0], [0], [1], [0, 0, 1, 1], [], []>} : vector<8x256xbf16>, vector<256x256xbf16>, vector<8x256xf32> -> vector<8x256xf32>
    %24 = vector.broadcast %21 : vector<1x256xf32> to vector<8x256xf32>
    %25 = arith.addf %23, %24 : vector<8x256xf32>
    %26 = arith.truncf %25 : vector<8x256xf32> to vector<8x256xbf16>
    %cst_13 = arith.constant 1.000980e-02 : bf16
    %27 = vector.broadcast %cst_13 : bf16 to vector<8x256xbf16>
    %28 = arith.mulf %27, %26 : vector<8x256xbf16>
    %29 = arith.maximumf %26, %28 : vector<8x256xbf16>
    %30 = vector.extract_strided_slice %0 {offsets = [3, 0], sizes = [1, 256], strides = [1, 1]} : vector<4x256xf32> to vector<1x256xf32>
    %c0_14 = arith.constant 0 : index
    %c0_15 = arith.constant 0 : index
    %31 = vector.load %arg5[%c0_14, %c0_15] : memref<256x256xbf16, #tpu.memory_space<vmem>>, vector<256x256xbf16>
    %cst_16 = arith.constant dense<0.000000e+00> : vector<8x256xf32>
    %32 = tpu.matmul %29, %31, %cst_16 {dimension_numbers = #tpu.dot_dimension_numbers<[1], [0], [0], [1], [0, 0, 1, 1], [], []>} : vector<8x256xbf16>, vector<256x256xbf16>, vector<8x256xf32> -> vector<8x256xf32>
    %33 = vector.broadcast %30 : vector<1x256xf32> to vector<8x256xf32>
    %34 = arith.addf %32, %33 : vector<8x256xf32>
    %35 = arith.truncf %34 : vector<8x256xf32> to vector<8x256xbf16>
    %cst_17 = arith.constant 1.000980e-02 : bf16
    %36 = vector.broadcast %cst_17 : bf16 to vector<8x256xbf16>
    %37 = arith.mulf %36, %35 : vector<8x256xbf16>
    %38 = arith.maximumf %35, %37 : vector<8x256xbf16>
    %c0_18 = arith.constant 0 : index
    %c0_19 = arith.constant 0 : index
    %39 = vector.load %arg6[%c0_18, %c0_19] : memref<256x4xbf16, #tpu.memory_space<vmem>>, vector<256x4xbf16>
    %cst_20 = arith.constant dense<0.000000e+00> : vector<8x4xf32>
    %40 = tpu.matmul %38, %39, %cst_20 {dimension_numbers = #tpu.dot_dimension_numbers<[1], [0], [0], [1], [0, 0, 1, 1], [], []>} : vector<8x256xbf16>, vector<256x4xbf16>, vector<8x4xf32> -> vector<8x4xf32>
    %c0_21 = arith.constant 0 : index
    %c0_22 = arith.constant 0 : index
    %41 = vector.load %arg8[%c0_21, %c0_22] : memref<1x4xf32, #tpu.memory_space<vmem>>, vector<1x4xf32>
    %42 = vector.broadcast %41 : vector<1x4xf32> to vector<8x4xf32>
    %43 = arith.addf %40, %42 : vector<8x4xf32>
    %c0_23 = arith.constant 0 : index
    %c0_24 = arith.constant 0 : index
    %44 = vector.load %arg9[%c0_23, %c0_24] : memref<8x4xf32, #tpu.memory_space<vmem>>, vector<8x4xf32>
    tpu.vector_store %arg9[%c0_23, %c0_24], %43 {strides = array<i32>} : memref<8x4xf32, #tpu.memory_space<vmem>>, vector<8x4xf32>,
    return
  }
  func.func @transform_0(%arg0: i32) -> (i32, i32) {
    %c0_i32 = arith.constant 0 : i32
    %c0_i32_0 = arith.constant 0 : i32
    return %arg0, %c0_i32 : i32, i32
  }
  func.func @transform_1(%arg0: i32) -> (i32, i32) {
    %c0_i32 = arith.constant 0 : i32
    %c0_i32_0 = arith.constant 0 : i32
    %c0_i32_1 = arith.constant 0 : i32
    return %c0_i32, %c0_i32_0 : i32, i32
  }
  func.func @transform_2(%arg0: i32) -> (i32, i32) {
    %c0_i32 = arith.constant 0 : i32
    %c0_i32_0 = arith.constant 0 : i32
    %c0_i32_1 = arith.constant 0 : i32
    return %c0_i32, %c0_i32_0 : i32, i32
  }
  func.func @transform_3(%arg0: i32) -> (i32, i32) {
    %c0_i32 = arith.constant 0 : i32
    %c0_i32_0 = arith.constant 0 : i32
    %c0_i32_1 = arith.constant 0 : i32
    return %c0_i32, %c0_i32_0 : i32, i32
  }
  func.func @transform_4(%arg0: i32) -> (i32, i32) {
    %c0_i32 = arith.constant 0 : i32
    %c0_i32_0 = arith.constant 0 : i32
    %c0_i32_1 = arith.constant 0 : i32
    return %c0_i32, %c0_i32_0 : i32, i32
  }
  func.func @transform_5(%arg0: i32) -> (i32, i32) {
    %c0_i32 = arith.constant 0 : i32
    %c0_i32_0 = arith.constant 0 : i32
    %c0_i32_1 = arith.constant 0 : i32
    return %c0_i32, %c0_i32_0 : i32, i32
  }
  func.func @transform_6(%arg0: i32) -> (i32, i32) {
    %c0_i32 = arith.constant 0 : i32
    %c0_i32_0 = arith.constant 0 : i32
    %c0_i32_1 = arith.constant 0 : i32
    return %c0_i32, %c0_i32_0 : i32, i32
  }
  func.func @transform_7(%arg0: i32) -> (i32, i32) {
    %c0_i32 = arith.constant 0 : i32
    %c0_i32_0 = arith.constant 0 : i32
    %c0_i32_1 = arith.constant 0 : i32
    return %c0_i32, %c0_i32_0 : i32, i32
  }
  func.func @transform_8(%arg0: i32) -> (i32, i32) {
    %c0_i32 = arith.constant 0 : i32
    %c0_i32_0 = arith.constant 0 : i32
    return %arg0, %c0_i32 : i32, i32
  }
}

</mosaic_0001>

<bundles_post_ra>
// kernel: tpu_custom_call.1
= control target key start
LH: loop header
LB: loop body
LE: loop exit
PB: predicated region body
PF: predicated region fallthrough
CT: control target
= control target key end

     0   :  { %13 = vsyncpa [#allocation3], 0  ;;  %s1677_s0 = inlined_call_operand.vmem [shape: f32[8,4], index: 0, kind: input, shape index: {}]   ;;  %s1678_s1 = inlined_call_operand.vmem [shape: bf16[4,256], index: 1, kind: input, shape index: {}]   ;;  %s1679_s2 = inlined_call_operand.hbm [shape: bf16[256,256], index: 2, kind: input, shape index: {}]   ;;  %s1680_s3 = inlined_call_operand.hbm [shape: bf16[256,256], index: 3, kind: input, shape index: {}]   ;;  %s1681_s4 = inlined_call_operand.hbm [shape: bf16[256,256], index: 4, kind: input, shape index: {}]   ;;  %s1682_s5 = inlined_call_operand.vmem [shape: bf16[256,4], index: 5, kind: input, shape index: {}]   ;;  %s1683_s6 = inlined_call_operand.vmem [shape: f32[4,256], index: 6, kind: input, shape index: {}]   ;;  %s1684_s7 = inlined_call_operand.vmem [shape: f32[1,4], index: 7, kind: input, shape index: {}]   ;;  %s1685_s8 = inlined_call_operand.vmem [shape: f32[8,4], index: 8, kind: output, shape index: {}]  }
   0x1   :  { %14 = vsyncpa [#allocation5], 0  ;;  %s1489_s27 = smov [#allocation4]   ;;  %s1490_s29 = smov [#allocation2]  }
   0x2   :  { %s36_s28 = sshll.u32 %s1489_s27, 4  ;;  %s24_s30 = sshll.u32 %s1490_s29, 4  ;;  %s37_s28 = int_to_ptr.vmem [resolvable:$true] %s36_s28  ;;  %s1540_s30 = int_to_ptr.vmem [resolvable:$true] %s24_s30 }
   0x3   :  { %s1419_s11 = scalar_lea.hbm %s1680_s3, 4096 }
   0x4   :  { %p1420_p0 = scmp.ne.s32.totalorder %s1680_s3, %s1419_s11  ;;  %p1423_p1 = scmp.lt.u32.totalorder %s1419_s11, %s1680_s3 }
   0x6   :  { %p1425_p2 = pnand %p1423_p1, %p1420_p0 }
   0x8   :  { %1428 = shalt.err (!%p1425_p2)
}
   0x9   :  { %s1429_s16 = scalar_lea.vmem %s37_s28, 4096  ;;  %p1434_p4 = scmp.lt.s32.totalorder %s37_s28, %s37_s28 }
   0xa   :  { %p1430_p3 = scmp.ne.s32.totalorder %s37_s28, %s1429_s16  ;;  %p1435_p5 = scmp.lt.s32.totalorder %s1429_s16, %s1429_s16 }
   0xc   :  { %p1436_p6 = por %p1435_p5, %p1434_p4 }
   0xe   :  { %p1437_p7 = pnand %p1436_p6, %p1430_p3 }
  0x10   :  { %1440 = shalt.err (!%p1437_p7)
}
  0x11   :  { %s1491_s17 = smov 128   ;;  %s1492_s18 = smov 8  }
  0x12   :  { %42 = dma.hbm_to_vmem [thread:$0]  %s1680_s3, 4096, %s37_s28, [#allocation5], %s1491_s17, %s1491_s17, %s1492_s18  }
  0x13   :  { %s1441_s23 = scalar_lea.hbm %s1679_s2, 4096 }
  0x14   :  { %p1442_p8 = scmp.ne.s32.totalorder %s1679_s2, %s1441_s23  ;;  %p1445_p9 = scmp.lt.u32.totalorder %s1441_s23, %s1679_s2 }
  0x16   :  { %p1447_p10 = pnand %p1445_p9, %p1442_p8 }
  0x18   :  { %1450 = shalt.err (!%p1447_p10)
}
  0x19   :  { %s1451_s29 = scalar_lea.vmem %s1540_s30, 4096  ;;  %p1456_p12 = scmp.lt.s32.totalorder %s1540_s30, %s1540_s30 }
  0x1a   :  { %p1452_p11 = scmp.ne.s32.totalorder %s1540_s30, %s1451_s29  ;;  %p1457_p13 = scmp.lt.s32.totalorder %s1451_s29, %s1451_s29 }
  0x1c   :  { %p1458_p0 = por %p1457_p13, %p1456_p12 }
  0x1e   :  { %p1459_p1 = pnand %p1458_p0, %p1452_p11 }
  0x20   :  { %1462 = shalt.err (!%p1459_p1)
}
  0x21   :  { %30 = dma.hbm_to_vmem [thread:$0]  %s1679_s2, 4096, %s1540_s30, [#allocation3], %s1491_s17, %s1491_s17, %s1492_s18  }
  0x22   :  { %s1493_s9 = smov [#allocation6]   ;;  %s1463_s13 = scalar_lea.hbm %s1681_s4, 4096 }
  0x23   :  { %s48_s10 = sshll.u32 %s1493_s9, 4  ;;  %p1464_p2 = scmp.ne.s32.totalorder %s1681_s4, %s1463_s13  ;;  %s49_s10 = int_to_ptr.vmem [resolvable:$true] %s48_s10 }
  0x24   :  { %p1467_p3 = scmp.lt.u32.totalorder %s1463_s13, %s1681_s4 }
  0x26   :  { %p1469_p4 = pnand %p1467_p3, %p1464_p2 }
  0x28   :  { %1472 = shalt.err (!%p1469_p4)
}
  0x29   :  { %s1473_s20 = scalar_lea.vmem %s49_s10, 4096  ;;  %p1478_p6 = scmp.lt.s32.totalorder %s49_s10, %s49_s10 }
  0x2a   :  { %p1474_p5 = scmp.ne.s32.totalorder %s49_s10, %s1473_s20  ;;  %p1479_p7 = scmp.lt.s32.totalorder %s1473_s20, %s1473_s20 }
  0x2c   :  { %p1480_p8 = por %p1479_p7, %p1478_p6 }
  0x2e   :  { %p1481_p9 = pnand %p1480_p8, %p1474_p5 }
  0x30   :  { %1484 = shalt.err (!%p1481_p9)
}
  0x31   :  { %54 = dma.hbm_to_vmem [thread:$0]  %s1681_s4, 4096, %s49_s10, [#allocation5], %s1491_s17, %s1491_s17, %s1492_s18  }
  0x32   :  { %1485 = dma.done.wait [#allocation3], 4096  }
  0x33   :  { %1486 = vsyncadd [#allocation3], 4294963200 }
  0x34   :  { %1487 = dma.done.wait [#allocation5], 8192  }
  0x35   :  { %1488 = vsyncadd [#allocation5], 4294959104  ;;  %v1494_v0 = vmov 0   ;;  %vm108_vm0 = vcmask 1041408   ;;  %v73_v2 = vld [vmem:[%s1677_s0] sm:$0xff]  ;;  %vm104_vm1 = vcmask 31744  }
  0x36   :  { %147 = vmatprep.mubr.bf16.mxu0 %v1494_v0  ;;  %v1115_v1 = vld.sshfl [vmem:[%s1678_s1] sm:$0x33 pattern:$0x76325410]  ;;  %v1259_v5 = vld [vmem:[#allocation2 + $0x4] ss:$8 sps:$4 sm:$0xff]   ;;  %v74_v8 = vpack.c.bf16 %v73_v2, %v73_v2  ;;  %v77_v2 = vlaneseq }
  0x37   :  { %v103_v3 = vcombine.high %v1115_v1, %v1115_v1  ;;  %v110_v4 = vsel %vm108_vm0, %v1115_v1, 0  ;;  %v1261_v6 = vld [vmem:[#allocation2] ss:$8 sps:$4 sm:$0xff]   ;;  %v1262_v7 = vld [vmem:[#allocation2 + $0x14] ss:$8 sps:$4 sm:$0xff]   ;;  %372 = vmatprep.subr.bf16.mxu1 %v1259_v5 }
  0x38   :  { %373 = vmatpush1.bf16.msra.mxu1 %v1261_v6  ;;  %v1264_v9 = vld [vmem:[#allocation2 + $0x10] ss:$8 sps:$4 sm:$0xff]   ;;  %v1265_v10 = vld [vmem:[#allocation2 + $0x24] ss:$8 sps:$4 sm:$0xff]   ;;  %v1267_v11 = vld [vmem:[#allocation2 + $0x20] ss:$8 sps:$4 sm:$0xff]  }
  0x39   :  { %1116 = vmatprep.subr.msk.bf16.mxu0 %vm108_vm0, %v103_v3  ;;  %374 = vmatprep.subr.bf16.mxu1 %v1262_v7  ;;  %v1268_v12 = vld [vmem:[#allocation2 + $0x34] ss:$8 sps:$4 sm:$0xff]   ;;  %v1270_v13 = vld [vmem:[#allocation2 + $0x30] ss:$8 sps:$4 sm:$0xff]   ;;  %v1271_v14 = vld [vmem:[#allocation2 + $0x44] ss:$8 sps:$4 sm:$0xff]  }
  0x3a   :  { %116 = vmatpush1.bf16.msra.mxu0 %v110_v4  ;;  %v1273_v15 = vld [vmem:[#allocation2 + $0x40] ss:$8 sps:$4 sm:$0xff]   ;;  %v1274_v16 = vld [vmem:[#allocation2 + $0x54] ss:$8 sps:$4 sm:$0xff]   ;;  %v1276_v17 = vld [vmem:[#allocation2 + $0x50] ss:$8 sps:$4 sm:$0xff]  }
  0x3b   :  { %v1277_v18 = vld [vmem:[#allocation2 + $0x64] ss:$8 sps:$4 sm:$0xff]   ;;  %v1279_v19 = vld [vmem:[#allocation2 + $0x60] ss:$8 sps:$4 sm:$0xff]   ;;  %v1280_v20 = vld [vmem:[#allocation2 + $0x74] ss:$8 sps:$4 sm:$0xff]  }
  0x3c   :  { %375 = vmatpush1.bf16.msra.mxu1 %v1264_v9  ;;  %v1282_v21 = vld [vmem:[#allocation2 + $0x70] ss:$8 sps:$4 sm:$0xff]   ;;  %v1283_v22 = vld [vmem:[#allocation2 + $0x84] ss:$8 sps:$4 sm:$0xff]   ;;  %v1285_v23 = vld [vmem:[#allocation2 + $0x80] ss:$8 sps:$4 sm:$0xff]  }
  0x3d   :  { %1117 = vmatmul.mubr.msk.bf16.vlgmr.msra.gmra.mrb[0].mxu0 %vm104_vm1, %v74_v8  ;;  %376 = vmatprep.subr.bf16.mxu1 %v1265_v10  ;;  %v1286_v24 = vld [vmem:[#allocation2 + $0x94] ss:$8 sps:$4 sm:$0xff]   ;;  %v1288_v25 = vld [vmem:[#allocation2 + $0x90] ss:$8 sps:$4 sm:$0xff]   ;;  %v1289_v26 = vld [vmem:[#allocation2 + $0xa4] ss:$8 sps:$4 sm:$0xff]  }
  0x3e   :  { %v1291_v27 = vld [vmem:[#allocation2 + $0xa0] ss:$8 sps:$4 sm:$0xff]   ;;  %v1292_v28 = vld [vmem:[#allocation2 + $0xb4] ss:$8 sps:$4 sm:$0xff]   ;;  %v1294_v29 = vld [vmem:[#allocation2 + $0xb0] ss:$8 sps:$4 sm:$0xff]  }
  0x3f   :  { %v1295_v30 = vld [vmem:[#allocation2 + $0xc4] ss:$8 sps:$4 sm:$0xff]   ;;  %v1297_v31 = vld [vmem:[#allocation2 + $0xc0] ss:$8 sps:$4 sm:$0xff]   ;;  %v1298_v32 = vld [vmem:[#allocation2 + $0xd4] ss:$8 sps:$4 sm:$0xff]  }
  0x40   :  { %377 = vmatpush1.bf16.msra.mxu1 %v1267_v11  ;;  %v1300_v33 = vld [vmem:[#allocation2 + $0xd0] ss:$8 sps:$4 sm:$0xff]   ;;  %v1301_v34 = vld [vmem:[#allocation2 + $0xe4] ss:$8 sps:$4 sm:$0xff]   ;;  %v1303_v35 = vld [vmem:[#allocation2 + $0xe0] ss:$8 sps:$4 sm:$0xff]  }
  0x41   :  { %378 = vmatprep.subr.bf16.mxu1 %v1268_v12  ;;  %v1304_v36 = vld [vmem:[#allocation2 + $0xf4] ss:$8 sps:$4 sm:$0xff]   ;;  %v1306_v37 = vld [vmem:[#allocation2 + $0xf0] ss:$8 sps:$4 sm:$0xff]   ;;  %v1307_v38 = vld [vmem:[#allocation4] ss:$8 sps:$4 sm:$0xff]  }
  0x42   :  { %v1309_v39 = vld [vmem:[#allocation4 + $0x4] ss:$8 sps:$4 sm:$0xff]   ;;  %v1312_v40 = vld [vmem:[#allocation4 + $0x14] ss:$8 sps:$4 sm:$0xff]   ;;  %v1310_v41 = vld [vmem:[#allocation4 + $0x10] ss:$8 sps:$4 sm:$0xff]  }
  0x43   :  { %629 = vmatprep.subr.bf16.mxu0 %v1309_v39  ;;  %v1315_v42 = vld [vmem:[#allocation4 + $0x24] ss:$8 sps:$4 sm:$0xff]   ;;  %v1313_v43 = vld [vmem:[#allocation4 + $0x20] ss:$8 sps:$4 sm:$0xff]   ;;  %v1318_v44 = vld [vmem:[#allocation4 + $0x34] ss:$8 sps:$4 sm:$0xff]  }
  0x44   :  { %379 = vmatpush1.bf16.msra.mxu1 %v1270_v13  ;;  %630 = vmatpush1.bf16.msra.mxu0 %v1307_v38  ;;  %v1316_v45 = vld [vmem:[#allocation4 + $0x30] ss:$8 sps:$4 sm:$0xff]   ;;  %v1321_v46 = vld [vmem:[#allocation4 + $0x44] ss:$8 sps:$4 sm:$0xff]   ;;  %v1319_v47 = vld [vmem:[#allocation4 + $0x40] ss:$8 sps:$4 sm:$0xff]  }
  0x45   :  { %380 = vmatprep.subr.bf16.mxu1 %v1271_v14  ;;  %631 = vmatprep.subr.bf16.mxu0 %v1312_v40  ;;  %v1324_v48 = vld [vmem:[#allocation4 + $0x54] ss:$8 sps:$4 sm:$0xff]   ;;  %v1322_v49 = vld [vmem:[#allocation4 + $0x50] ss:$8 sps:$4 sm:$0xff]   ;;  %v1327_v50 = vld [vmem:[#allocation4 + $0x64] ss:$8 sps:$4 sm:$0xff]  }
  0x46   :  { %v1325_v51 = vld [vmem:[#allocation4 + $0x60] ss:$8 sps:$4 sm:$0xff]   ;;  %v1330_v52 = vld [vmem:[#allocation4 + $0x74] ss:$8 sps:$4 sm:$0xff]   ;;  %v1328_v53 = vld [vmem:[#allocation4 + $0x70] ss:$8 sps:$4 sm:$0xff]  }
  0x47   :  { %v1333_v54 = vld [vmem:[#allocation4 + $0x84] ss:$8 sps:$4 sm:$0xff]   ;;  %v1331_v55 = vld [vmem:[#allocation4 + $0x80] ss:$8 sps:$4 sm:$0xff]   ;;  %v1336_v56 = vld [vmem:[#allocation4 + $0x94] ss:$8 sps:$4 sm:$0xff]  }
  0x48   :  { %381 = vmatpush1.bf16.msra.mxu1 %v1273_v15  ;;  %632 = vmatpush1.bf16.msra.mxu0 %v1310_v41  ;;  %v1334_v57 = vld [vmem:[#allocation4 + $0x90] ss:$8 sps:$4 sm:$0xff]   ;;  %v1339_v58 = vld [vmem:[#allocation4 + $0xa4] ss:$8 sps:$4 sm:$0xff]   ;;  %v1337_v59 = vld [vmem:[#allocation4 + $0xa0] ss:$8 sps:$4 sm:$0xff]  }
  0x49   :  { %382 = vmatprep.subr.bf16.mxu1 %v1274_v16  ;;  %633 = vmatprep.subr.bf16.mxu0 %v1315_v42  ;;  %v1342_v60 = vld [vmem:[#allocation4 + $0xb4] ss:$8 sps:$4 sm:$0xff]   ;;  %v1340_v61 = vld [vmem:[#allocation4 + $0xb0] ss:$8 sps:$4 sm:$0xff]   ;;  %v1345_v62 = vld [vmem:[#allocation4 + $0xc4] ss:$8 sps:$4 sm:$0xff]  }
  0x4a   :  { %v1343_v63 = vld [vmem:[#allocation4 + $0xc0] ss:$8 sps:$4 sm:$0xff]   ;;  %v1348_v0 = vld [vmem:[#allocation4 + $0xd4] ss:$8 sps:$4 sm:$0xff]   ;;  %v1346_v1 = vld [vmem:[#allocation4 + $0xd0] ss:$8 sps:$4 sm:$0xff]  }
  0x4b   :  { %v1599_v3 = vshrl.u32 %v77_v2, 7  ;;  %v1605_v5 = vld [vmem:[%s1683_s6] sm:$0xff]  ;;  %v1370_v38 = vld [vmem:[#allocation6 + $0x50] ss:$8 sps:$4 sm:$0xff]   ;;  %v1378_v41 = vld [vmem:[#allocation6 + $0x74] ss:$8 sps:$4 sm:$0xff]  }
  0x4c   :  { %383 = vmatpush1.bf16.msra.mxu1 %v1276_v17  ;;  %634 = vmatpush1.bf16.msra.mxu0 %v1313_v43  ;;  %v1375_v39 = vld [vmem:[#allocation6 + $0x64] ss:$8 sps:$4 sm:$0xff]   ;;  %v1373_v40 = vld [vmem:[#allocation6 + $0x60] ss:$8 sps:$4 sm:$0xff]   ;;  %v1376_v42 = vld [vmem:[#allocation6 + $0x70] ss:$8 sps:$4 sm:$0xff]  }
  0x4d   :  { %384 = vmatprep.subr.bf16.mxu1 %v1277_v18  ;;  %635 = vmatprep.subr.bf16.mxu0 %v1318_v44  ;;  %v79_v4 = vsub.s32 0, %v1599_v3  ;;  %v83_v6 = vsub.s32 4, %v1599_v3  ;;  %v1381_v43 = vld [vmem:[#allocation6 + $0x84] ss:$8 sps:$4 sm:$0xff]   ;;  %v1379_v44 = vld [vmem:[#allocation6 + $0x80] ss:$8 sps:$4 sm:$0xff]  }
  0x4f   :  { %v80_v7 = vrot.slane %v1605_v5, %v79_v4  ;;  %v84_v8 = vrot.slane %v1605_v5, %v83_v6 }
  0x50   :  { %385 = vmatpush1.bf16.msra.mxu1 %v1279_v19  ;;  %636 = vmatpush1.bf16.msra.mxu0 %v1316_v45  ;;  %v1384_v45 = vld [vmem:[#allocation6 + $0x94] ss:$8 sps:$4 sm:$0xff]  }
  0x51   :  { %386 = vmatprep.subr.bf16.mxu1 %v1280_v20  ;;  %637 = vmatprep.subr.bf16.mxu0 %v1321_v46  ;;  %v90_v9 = vrot.slane %v80_v7, %v79_v4  ;;  %v94_v10 = vrot.slane %v84_v8, %v79_v4  ;;  %v1382_v46 = vld [vmem:[#allocation6 + $0x90] ss:$8 sps:$4 sm:$0xff]  }
  0x54   :  { %387 = vmatpush1.bf16.msra.mxu1 %v1282_v21  ;;  %638 = vmatpush1.bf16.msra.mxu0 %v1319_v47  ;;  %v1387_v47 = vld [vmem:[#allocation6 + $0xa4] ss:$8 sps:$4 sm:$0xff]  }
  0x55   :  { %388 = vmatprep.subr.bf16.mxu1 %v1283_v22  ;;  %639 = vmatprep.subr.bf16.mxu0 %v1324_v48  ;;  %v1385_v48 = vld [vmem:[#allocation6 + $0xa0] ss:$8 sps:$4 sm:$0xff]  }
  0x58   :  { %389 = vmatpush1.bf16.msra.mxu1 %v1285_v23  ;;  %640 = vmatpush1.bf16.msra.mxu0 %v1322_v49  ;;  %v1351_v23 = vld [vmem:[#allocation4 + $0xe4] ss:$8 sps:$4 sm:$0xff]   ;;  %v1390_v49 = vld [vmem:[#allocation6 + $0xb4] ss:$8 sps:$4 sm:$0xff]  }
  0x59   :  { %390 = vmatprep.subr.bf16.mxu1 %v1286_v24  ;;  %641 = vmatprep.subr.bf16.mxu0 %v1327_v50  ;;  %v1349_v24 = vld [vmem:[#allocation4 + $0xe0] ss:$8 sps:$4 sm:$0xff]   ;;  %v1388_v50 = vld [vmem:[#allocation6 + $0xb0] ss:$8 sps:$4 sm:$0xff]  }
  0x5c   :  { %391 = vmatpush1.bf16.msra.mxu1 %v1288_v25  ;;  %642 = vmatpush1.bf16.msra.mxu0 %v1325_v51  ;;  %v1354_v25 = vld [vmem:[#allocation4 + $0xf4] ss:$8 sps:$4 sm:$0xff]   ;;  %v1393_v51 = vld [vmem:[#allocation6 + $0xc4] ss:$8 sps:$4 sm:$0xff]  }
  0x5d   :  { %392 = vmatprep.subr.bf16.mxu1 %v1289_v26  ;;  %643 = vmatprep.subr.bf16.mxu0 %v1330_v52  ;;  %v1352_v26 = vld [vmem:[#allocation4 + $0xf0] ss:$8 sps:$4 sm:$0xff]   ;;  %v1391_v52 = vld [vmem:[#allocation6 + $0xc0] ss:$8 sps:$4 sm:$0xff]  }
  0x60   :  { %393 = vmatpush1.bf16.msra.mxu1 %v1291_v27  ;;  %644 = vmatpush1.bf16.msra.mxu0 %v1328_v53  ;;  %v1355_v27 = vld [vmem:[#allocation6] ss:$8 sps:$4 sm:$0xff]   ;;  %v1396_v53 = vld [vmem:[#allocation6 + $0xd4] ss:$8 sps:$4 sm:$0xff]  }
  0x61   :  { %394 = vmatprep.subr.bf16.mxu1 %v1292_v28  ;;  %645 = vmatprep.subr.bf16.mxu0 %v1333_v54  ;;  %v1357_v28 = vld [vmem:[#allocation6 + $0x4] ss:$8 sps:$4 sm:$0xff]   ;;  %v1394_v54 = vld [vmem:[#allocation6 + $0xd0] ss:$8 sps:$4 sm:$0xff]  }
  0x64   :  { %395 = vmatpush1.bf16.msra.mxu1 %v1294_v29  ;;  %646 = vmatpush1.bf16.msra.mxu0 %v1331_v55  ;;  %v1360_v29 = vld [vmem:[#allocation6 + $0x14] ss:$8 sps:$4 sm:$0xff]   ;;  %v196_v55 = vsub.s32 1, %v1599_v3 }
  0x65   :  { %396 = vmatprep.subr.bf16.mxu1 %v1295_v30  ;;  %647 = vmatprep.subr.bf16.mxu0 %v1336_v56  ;;  %v1358_v30 = vld [vmem:[#allocation6 + $0x10] ss:$8 sps:$4 sm:$0xff]   ;;  %v200_v56 = vsub.s32 5, %v1599_v3 }
  0x68   :  { %397 = vmatpush1.bf16.msra.mxu1 %v1297_v31  ;;  %648 = vmatpush1.bf16.msra.mxu0 %v1334_v57  ;;  %v1363_v31 = vld [vmem:[#allocation6 + $0x24] ss:$8 sps:$4 sm:$0xff]   ;;  %v197_v57 = vrot.slane %v1605_v5, %v196_v55 }
  0x69   :  { %398 = vmatprep.subr.bf16.mxu1 %v1298_v32  ;;  %649 = vmatprep.subr.bf16.mxu0 %v1339_v58  ;;  %v1361_v32 = vld [vmem:[#allocation6 + $0x20] ss:$8 sps:$4 sm:$0xff]   ;;  %v201_v58 = vrot.slane %v1605_v5, %v200_v56 }
  0x6c   :  { %399 = vmatpush1.bf16.msra.mxu1 %v1300_v33  ;;  %650 = vmatpush1.bf16.msra.mxu0 %v1337_v59  ;;  %v1366_v33 = vld [vmem:[#allocation6 + $0x34] ss:$8 sps:$4 sm:$0xff]   ;;  %v207_v59 = vrot.slane %v197_v57, %v196_v55 }
  0x6d   :  { %400 = vmatprep.subr.bf16.mxu1 %v1301_v34  ;;  %651 = vmatprep.subr.bf16.mxu0 %v1342_v60  ;;  %v1364_v34 = vld [vmem:[#allocation6 + $0x30] ss:$8 sps:$4 sm:$0xff]   ;;  %v211_v60 = vrot.slane %v201_v58, %v196_v55 }
  0x70   :  { %401 = vmatpush1.bf16.msra.mxu1 %v1303_v35  ;;  %652 = vmatpush1.bf16.msra.mxu0 %v1340_v61  ;;  %v1369_v35 = vld [vmem:[#allocation6 + $0x44] ss:$8 sps:$4 sm:$0xff]  }
  0x71   :  { %402 = vmatprep.subr.bf16.mxu1 %v1304_v36  ;;  %653 = vmatprep.subr.bf16.mxu0 %v1345_v62  ;;  %v1367_v36 = vld [vmem:[#allocation6 + $0x40] ss:$8 sps:$4 sm:$0xff]  }
  0x74   :  { %403 = vmatpush1.bf16.msra.mxu1 %v1306_v37  ;;  %654 = vmatpush1.bf16.msra.mxu0 %v1343_v63  ;;  %v1372_v37 = vld [vmem:[#allocation6 + $0x54] ss:$8 sps:$4 sm:$0xff]  }
  0x75   :  { %655 = vmatprep.subr.bf16.mxu0 %v1348_v0  ;;  %886 = vmatprep.subr.bf16.mxu1 %v1357_v28 }
  0x78   :  { %656 = vmatpush1.bf16.msra.mxu0 %v1346_v1 }
  0x79   :  { %657 = vmatprep.subr.bf16.mxu0 %v1351_v23  ;;  %v1411_v23 = vld [vmem:[%s1682_s5 + $0x60] sm:$0xff]  }
  0x7c   :  { %658 = vmatpush1.bf16.msra.mxu0 %v1349_v24  ;;  %v1412_v24 = vld [vmem:[%s1682_s5 + $0x20] sm:$0xff]  }
  0x7d   :  { %659 = vmatprep.subr.bf16.mxu0 %v1354_v25  ;;  %v1413_v25 = vld [vmem:[%s1682_s5 + $0x68] sm:$0xff]  }
  0x80   :  { %660 = vmatpush1.bf16.msra.mxu0 %v1352_v26  ;;  %v453_v26 = vsub.s32 2, %v1599_v3 }
  0x82   :  { %v454_v28 = vrot.slane %v1605_v5, %v453_v26 }
 0x110   :  { %v149_v11 = vpop.f32.mrb[0].mxu0 }
 0x111   :  { %v150_v12 = vadd.f32 %v149_v11, %v90_v9  ;;  %v151_v13 = vpop.f32.mrb[1].mxu0  ;;  %v1399_v11 = vld [vmem:[#allocation6 + $0xe4] ss:$8 sps:$4 sm:$0xff]  }
 0x112   :  { %v152_v14 = vadd.f32 %v151_v13, %v94_v10  ;;  %v153_v15 = vpop.f32.mrb[2].mxu0  ;;  %v1402_v13 = vld [vmem:[#allocation6 + $0xf4] ss:$8 sps:$4 sm:$0xff]  }
 0x113   :  { %v156_v16 = vpack.c.bf16 %v150_v12, %v150_v12  ;;  %v154_v17 = vpop.f32.mrb[3].mxu0  ;;  %v1397_v12 = vld [vmem:[#allocation6 + $0xe0] ss:$8 sps:$4 sm:$0xff]  }
 0x114   :  { %v157_v18 = vpack.c.bf16 %v152_v14, %v152_v14  ;;  %v1400_v14 = vld [vmem:[#allocation6 + $0xf0] ss:$8 sps:$4 sm:$0xff]   ;;  %v1403_v15 = vld [vmem:[%s1682_s5 + $0x40] sm:$0xff]   ;;  %v1405_v17 = vld [vmem:[%s1682_s5 + $0x48] sm:$0xff]  }
 0x115   :  { %v158_v19 = vmul.bf16 1009007652, %v156_v16  ;;  %1231 = vmatprep.subr.bf16.mxu0 %v1403_v15 }
 0x116   :  { %v159_v20 = vmul.bf16 1009007652, %v157_v18 }
 0x117   :  { %v160_v22 = vmax.bf16 %v158_v19, %v156_v16  ;;  %v1404_v16 = vld [vmem:[%s1682_s5] sm:$0xff]   ;;  %v1407_v19 = vld [vmem:[%s1682_s5 + $0x50] sm:$0xff]  }
 0x118   :  { %v161_v21 = vmax.bf16 %v159_v20, %v157_v18  ;;  %v1406_v18 = vld [vmem:[%s1682_s5 + $0x8] sm:$0xff]   ;;  %v1408_v20 = vld [vmem:[%s1682_s5 + $0x10] sm:$0xff]  }
 0x11a   :  { %404 = vmatprep.mubr.bf16.mxu1 %v161_v21  ;;  %v1409_v21 = vld [vmem:[%s1682_s5 + $0x58] sm:$0xff]  }
 0x11b   :  { %405 = vmatmul.mubr.bf16.vlgmr.msra.gmra.mrb[0].mxu1 %v160_v22  ;;  %v1410_v22 = vld [vmem:[%s1682_s5 + $0x18] sm:$0xff]  }
 0x11c   :  { %887 = vmatpush1.bf16.msra.mxu1 %v1355_v27  ;;  %v457_v27 = vsub.s32 6, %v1599_v3 }
 0x11d   :  { %888 = vmatprep.subr.bf16.mxu1 %v1360_v29 }
 0x11e   :  { %v458_v29 = vrot.slane %v1605_v5, %v457_v27 }
 0x120   :  { %889 = vmatpush1.bf16.msra.mxu1 %v1358_v30  ;;  %v464_v30 = vrot.slane %v454_v28, %v453_v26 }
 0x121   :  { %890 = vmatprep.subr.bf16.mxu1 %v1363_v31  ;;  %v468_v31 = vrot.slane %v458_v29, %v453_v26 }
 0x124   :  { %891 = vmatpush1.bf16.msra.mxu1 %v1361_v32 }
 0x125   :  { %892 = vmatprep.subr.bf16.mxu1 %v1366_v33 }
 0x128   :  { %893 = vmatpush1.bf16.msra.mxu1 %v1364_v34 }
 0x129   :  { %894 = vmatprep.subr.bf16.mxu1 %v1369_v35 }
 0x12c   :  { %895 = vmatpush1.bf16.msra.mxu1 %v1367_v36 }
 0x12d   :  { %896 = vmatprep.subr.bf16.mxu1 %v1372_v37 }
 0x130   :  { %897 = vmatpush1.bf16.msra.mxu1 %v1370_v38 }
 0x131   :  { %898 = vmatprep.subr.bf16.mxu1 %v1375_v39 }
 0x134   :  { %899 = vmatpush1.bf16.msra.mxu1 %v1373_v40 }
 0x135   :  { %900 = vmatprep.subr.bf16.mxu1 %v1378_v41 }
 0x138   :  { %901 = vmatpush1.bf16.msra.mxu1 %v1376_v42 }
 0x139   :  { %902 = vmatprep.subr.bf16.mxu1 %v1381_v43 }
 0x13c   :  { %903 = vmatpush1.bf16.msra.mxu1 %v1379_v44  ;;  %v1414_v44 = vld [vmem:[%s1682_s5 + $0x28] sm:$0xff]  }
 0x13d   :  { %904 = vmatprep.subr.bf16.mxu1 %v1384_v45  ;;  %v1415_v45 = vld [vmem:[%s1682_s5 + $0x70] sm:$0xff]  }
 0x140   :  { %905 = vmatpush1.bf16.msra.mxu1 %v1382_v46  ;;  %v1416_v46 = vld [vmem:[%s1682_s5 + $0x30] sm:$0xff]  }
 0x141   :  { %906 = vmatprep.subr.bf16.mxu1 %v1387_v47  ;;  %v1417_v47 = vld [vmem:[%s1682_s5 + $0x78] sm:$0xff]  }
 0x144   :  { %907 = vmatpush1.bf16.msra.mxu1 %v1385_v48  ;;  %v1418_v48 = vld [vmem:[%s1682_s5 + $0x38] sm:$0xff]  }
 0x145   :  { %908 = vmatprep.subr.bf16.mxu1 %v1390_v49  ;;  %v710_v49 = vsub.s32 3, %v1599_v3 }
 0x148   :  { %909 = vmatpush1.bf16.msra.mxu1 %v1388_v50  ;;  %v714_v50 = vsub.s32 7, %v1599_v3 }
 0x149   :  { %910 = vmatprep.subr.bf16.mxu1 %v1393_v51  ;;  %v711_v51 = vrot.slane %v1605_v5, %v710_v49 }
 0x14c   :  { %911 = vmatpush1.bf16.msra.mxu1 %v1391_v52  ;;  %v715_v52 = vrot.slane %v1605_v5, %v714_v50  ;;  %v1214_v5 = vld [vmem:[%s1684_s7] ss:$0 sm:$0xff] }
 0x14d   :  { %912 = vmatprep.subr.bf16.mxu1 %v1396_v53  ;;  %v721_v53 = vrot.slane %v711_v51, %v710_v49 }
 0x150   :  { %913 = vmatpush1.bf16.msra.mxu1 %v1394_v54  ;;  %v725_v54 = vrot.slane %v715_v52, %v710_v49 }
 0x151   :  { %914 = vmatprep.subr.bf16.mxu1 %v1399_v11 }
 0x154   :  { %915 = vmatpush1.bf16.msra.mxu1 %v1397_v12 }
 0x155   :  { %916 = vmatprep.subr.bf16.mxu1 %v1402_v13 }
 0x158   :  { %917 = vmatpush1.bf16.msra.mxu1 %v1400_v14 }
 0x1ee   :  { %v406_v61 = vpop.f32.mrb[0].mxu1 }
 0x1ef   :  { %v407_v62 = vadd.f32 %v406_v61, %v207_v59  ;;  %v408_v63 = vpop.f32.mrb[1].mxu1 }
 0x1f0   :  { %v409_v0 = vadd.f32 %v408_v63, %v211_v60  ;;  %v410_v1 = vpop.f32.mrb[2].mxu1 }
 0x1f1   :  { %v413_v2 = vpack.c.bf16 %v407_v62, %v407_v62  ;;  %v411_v4 = vpop.f32.mrb[3].mxu1 }
 0x1f2   :  { %v414_v6 = vpack.c.bf16 %v409_v0, %v409_v0 }
 0x1f3   :  { %v415_v7 = vmul.bf16 1009007652, %v413_v2 }
 0x1f4   :  { %v416_v8 = vmul.bf16 1009007652, %v414_v6 }
 0x1f5   :  { %v417_v10 = vmax.bf16 %v415_v7, %v413_v2 }
 0x1f6   :  { %v418_v9 = vmax.bf16 %v416_v8, %v414_v6 }
 0x1f8   :  { %661 = vmatprep.mubr.bf16.mxu0 %v418_v9 }
 0x1f9   :  { %662 = vmatmul.mubr.bf16.vlgmr.msra.gmra.mrb[4].mxu0 %v417_v10 }
 0x1fa   :  { %1232 = vmatpush3.bf16.msra.mxu0 %v1404_v16 }
 0x1fb   :  { %1233 = vmatprep.subr.bf16.mxu0 %v1405_v17 }
 0x1fe   :  { %1234 = vmatpush3.bf16.msra.mxu0 %v1406_v18 }
 0x1ff   :  { %1235 = vmatprep.subr.bf16.mxu0 %v1407_v19 }
 0x202   :  { %1236 = vmatpush3.bf16.msra.mxu0 %v1408_v20 }
 0x203   :  { %1237 = vmatprep.subr.bf16.mxu0 %v1409_v21 }
 0x206   :  { %1238 = vmatpush3.bf16.msra.mxu0 %v1410_v22 }
 0x207   :  { %1239 = vmatprep.subr.bf16.mxu0 %v1411_v23 }
 0x20a   :  { %1240 = vmatpush3.bf16.msra.mxu0 %v1412_v24 }
 0x20b   :  { %1241 = vmatprep.subr.bf16.mxu0 %v1413_v25 }
 0x20e   :  { %1242 = vmatpush3.bf16.msra.mxu0 %v1414_v44 }
 0x20f   :  { %1243 = vmatprep.subr.bf16.mxu0 %v1415_v45 }
 0x212   :  { %1244 = vmatpush3.bf16.msra.mxu0 %v1416_v46 }
 0x213   :  { %1245 = vmatprep.subr.bf16.mxu0 %v1417_v47 }
 0x216   :  { %1246 = vmatpush3.bf16.msra.mxu0 %v1418_v48 }
 0x2cc   :  { %v663_v32 = vpop.f32.mrb[4].mxu0 }
 0x2cd   :  { %v664_v33 = vadd.f32 %v663_v32, %v464_v30  ;;  %v665_v34 = vpop.f32.mrb[5].mxu0 }
 0x2ce   :  { %v666_v35 = vadd.f32 %v665_v34, %v468_v31  ;;  %v667_v36 = vpop.f32.mrb[6].mxu0 }
 0x2cf   :  { %v670_v37 = vpack.c.bf16 %v664_v33, %v664_v33  ;;  %v668_v38 = vpop.f32.mrb[7].mxu0 }
 0x2d0   :  { %v671_v39 = vpack.c.bf16 %v666_v35, %v666_v35 }
 0x2d1   :  { %v672_v40 = vmul.bf16 1009007652, %v670_v37 }
 0x2d2   :  { %v673_v41 = vmul.bf16 1009007652, %v671_v39 }
 0x2d3   :  { %v674_v43 = vmax.bf16 %v672_v40, %v670_v37 }
 0x2d4   :  { %v675_v42 = vmax.bf16 %v673_v41, %v671_v39 }
 0x2d6   :  { %918 = vmatprep.mubr.bf16.mxu1 %v675_v42 }
 0x2d7   :  { %919 = vmatmul.mubr.bf16.vlgmr.msra.gmra.mrb[4].mxu1 %v674_v43 }
 0x3aa   :  { %v920_v55 = vpop.f32.mrb[4].mxu1 }
 0x3ab   :  { %v921_v56 = vadd.f32 %v920_v55, %v721_v53  ;;  %v922_v57 = vpop.f32.mrb[5].mxu1 }
 0x3ac   :  { %v923_v58 = vadd.f32 %v922_v57, %v725_v54  ;;  %v924_v59 = vpop.f32.mrb[6].mxu1 }
 0x3ad   :  { %v927_v60 = vpack.c.bf16 %v921_v56, %v921_v56  ;;  %v925_v61 = vpop.f32.mrb[7].mxu1 }
 0x3ae   :  { %v928_v62 = vpack.c.bf16 %v923_v58, %v923_v58 }
 0x3af   :  { %v929_v63 = vmul.bf16 1009007652, %v927_v60 }
 0x3b0   :  { %v930_v0 = vmul.bf16 1009007652, %v928_v62 }
 0x3b1   :  { %v931_v2 = vmax.bf16 %v929_v63, %v927_v60 }
 0x3b2   :  { %v932_v1 = vmax.bf16 %v930_v0, %v928_v62 }
 0x3b4   :  { %1100 = vmatprep.mubr.bf16.mxu0 %v932_v1 }
 0x3b5   :  { %1101 = vmatmul.mubr.bf16.vlgmr.msra.gmra.mrb[8].mxu0 %v931_v2 }
 0x488   :  { %v1247_v3 = vpop.f32.mrb[8].mxu0 }
 0x489   :  { %v1248_v4 = vpop.f32.mrb[9].mxu0 }
 0x48a   :  { %v1249_v6 = vadd.f32 %v1248_v4, %v1247_v3  ;;  %v1250_v7 = vpop.f32.mrb[10].mxu0 }
 0x48b   :  { %v1251_v8 = vpop.f32.mrb[11].mxu0 }
 0x48c   :  { %v1103_v9 = vadd.f32 %v1249_v6, %v1214_v5 }
 0x48e   :  { %1108 = vst.msk [vmem:[%s1685_s8] sm:$0xff] %vm104_vm1, %v1103_v9 }
 0x48f   :  { %1113 = vsyncpa [#allocation3], 1 }
 0x490   :  { %1114 = vsyncpa [#allocation5], 1 }

</bundles_post_ra>
